<compile_context>
chip_gen: v5e
topology: v5e:2x2
jax: 0.10.0
libtpu: 0.0.40
codegen_flags: <defaults>
</compile_context>

<pallas_src>
import functools

import jax
import jax.numpy as jnp
from jax.experimental import pallas as pl
from jax.experimental.pallas import tpu as pltpu

_LANE = 128


# ----------------------------- helpers ---------------------------------------


def _round_up(v, m):
    return -(-v // m) * m


def _divisor_tiles(total, base):
    """All multiples of `base` that evenly divide `total` (total % base == 0)."""
    q = total // base
    return sorted(base * f for f in range(1, q + 1) if q % f == 0)


def _pick_tm(n, sublane, cap):
    """Row tile: multiple of `sublane`, <= cap, minimizing padded rows."""
    if n <= cap:
        return _round_up(n, sublane)
    best_tile, best_key = sublane, None
    t = sublane
    while t <= cap:
        key = (_round_up(n, t), -t)  # minimize padded rows, then prefer bigger tile
        if best_key is None or key < best_key:
            best_key, best_tile = key, t
        t += sublane
    return best_tile


def _vmem_capacity_bytes():
    try:
        return int(pltpu.get_tpu_info().vmem_capacity_bytes)
    except Exception:
        return 128 * 1024 * 1024  # v5e/v6e physical VMEM


# ----------------------------- kernels ----------------------------------------


def _linear_whole_k_kernel(x_ref, w_ref, b_ref, o_ref):
    # x_ref: (tm, D)  w_ref: (D, tn)  b_ref: (1, tn)  o_ref: (tm, tn)
    acc = jnp.dot(x_ref[...], w_ref[...], preferred_element_type=jnp.float32)
    o_ref[...] = (acc + b_ref[...].astype(jnp.float32)).astype(o_ref.dtype)


def _linear_k_loop_kernel(x_ref, w_ref, b_ref, o_ref, acc_ref):
    # x_ref: (tm, tk)  w_ref: (tk, tn)  b_ref: (1, tn)  o_ref: (tm, tn)
    # acc_ref: (tm, tn) f32 VMEM scratch, resident across the K axis.
    k = pl.program_id(2)

    @pl.when(k == 0)
    def _():
        acc_ref[...] = jnp.zeros_like(acc_ref)

    acc_ref[...] += jnp.dot(
        x_ref[...], w_ref[...], preferred_element_type=jnp.float32
    )

    @pl.when(k == pl.num_programs(2) - 1)
    def _():
        o_ref[...] = (acc_ref[...] + b_ref[...].astype(jnp.float32)).astype(
            o_ref.dtype
        )


# ----------------------------- forward ----------------------------------------


@functools.partial(jax.jit, static_argnames=("nclass", "test_vmem_budget"))
def _cls_forward(x, w_pad, b_pad, *, nclass, test_vmem_budget=None):
    """o = x @ W^T + b with W pre-transposed+padded to (d_pad, c_pad)."""
    n, d = x.shape
    d_pad, c_pad = w_pad.shape
    assert b_pad.shape == (1, c_pad)
    assert d <= d_pad and nclass <= c_pad

    in_dtype = x.dtype
    out_dtype = x.dtype
    isz = jnp.dtype(in_dtype).itemsize
    osz = jnp.dtype(out_dtype).itemsize
    sublane = {4: 8, 2: 16, 1: 32}.get(isz, 8)

    # ---- generation-aware VMEM budget ---------------------------------------
    phys_vmem = _vmem_capacity_bytes()  # 128 MiB v5e/v6e, 64 MiB/TC v7x
    vmem_limit = int(min(phys_vmem // 2, 64 * 1024 * 1024))
    usable = int((test_vmem_budget if test_vmem_budget else vmem_limit) * 0.8)

    # ---- tile selection ------------------------------------------------------
    TM_CAP, TN_CAP, TK_CAP = 512, 1024, 2048
    tm = _pick_tm(n, sublane, TM_CAP)
    n_pad = _round_up(n, tm)

    tn_opts = [t for t in _divisor_tiles(c_pad, _LANE) if t <= TN_CAP] or [_LANE]
    tk_opts = [t for t in _divisor_tiles(d_pad, _LANE) if t <= TK_CAP] or [_LANE]

    def ws_whole(tm_, tn_):  # double-buffered whole-K working set (bytes)
        return 2 * isz * (tm_ * d_pad + d_pad * tn_ + tn_) + 2 * osz * tm_ * tn_

    def ws_kloop(tm_, tn_, tk_):  # double-buffered K-loop working set + f32 acc
        return (
            2 * isz * (tm_ * tk_ + tk_ * tn_ + tn_)
            + 2 * osz * tm_ * tn_
            + 4 * tm_ * tn_
        )

    tn = max(tn_opts)
    tk = d_pad
    use_whole_k = ws_whole(tm, tn) <= usable

    if not use_whole_k:
        # Search (tm, tn, tk) that fits the budget, minimizing estimated HBM
        # re-streaming (x read C/tn times, W read N/tm times); tie-break on a
        # large tk to amortize per-step acc RMW and grid overhead.
        tm_opts = sorted(
            {
                tm,
                _round_up(max(tm // 2, sublane), sublane),
                _round_up(max(tm // 4, sublane), sublane),
                sublane,
            },
            reverse=True,
        )
        best = None
        for tm_c in tm_opts:
            n_pad_c = _round_up(n, tm_c)
            for tn_c in sorted(tn_opts, reverse=True):
                for tk_c in sorted(tk_opts, reverse=True):
                    if ws_kloop(tm_c, tn_c, tk_c) <= usable:
                        traffic = (
                            n_pad_c * d_pad * (c_pad // tn_c)
                            + c_pad * d_pad * (n_pad_c // tm_c)
                        )
                        key = (-traffic, tk_c, tn_c, tm_c)
                        if best is None or key > best[0]:
                            best = (key, (tm_c, tn_c, tk_c))
                        break  # largest fitting tk for this (tm, tn)
        if best is None:
            tm, tn, tk = sublane, _LANE, _LANE  # last-resort tiny tiles
        else:
            tm, tn, tk = best[1]
        n_pad = _round_up(n, tm)

    # ---- guarantee >=2 blocks on a parallel axis (keeps both v7x TCs busy) ---
    if (n_pad // tm) * (c_pad // tn) == 1:
        if n_pad >= 2 * sublane:
            tm = _round_up((n_pad + 1) // 2, sublane)
            n_pad = _round_up(n, tm)
        elif c_pad % (2 * _LANE) == 0:
            tn = c_pad // 2

    m_blocks = n_pad // tm
    c_blocks = c_pad // tn

    # ---- pad activation only if needed ---------------------------------------
    if (n_pad, d_pad) != (n, d):
        x_in = jnp.pad(x, ((0, n_pad - n), (0, d_pad - d)))
    else:
        x_in = x

    # ---- cost estimate (padded FLOPs, actual re-streamed traffic) ------------
    flops = 2 * n_pad * c_pad * d_pad
    if use_whole_k:
        bytes_accessed = (
            isz * (n_pad * d_pad * c_blocks + d_pad * c_pad + c_pad)
            + osz * n_pad * c_pad
        )
    else:
        bytes_accessed = (
            isz
            * (
                n_pad * d_pad * c_blocks
                + d_pad * c_pad * m_blocks
                + c_pad * m_blocks
            )
            + osz * n_pad * c_pad
        )
    cost = pl.CostEstimate(
        flops=int(flops), transcendentals=0, bytes_accessed=int(bytes_accessed)
    )

    # ---- dispatch -------------------------------------------------------------
    if use_whole_k:
        # C outermost: the weight block index only changes with the C block, so
        # each weight tile is DMA'd exactly once (x is re-read c_blocks times).
        grid = (c_blocks, m_blocks)
        out_padded = pl.pallas_call(
            _linear_whole_k_kernel,
            out_shape=jax.ShapeDtypeStruct((n_pad, c_pad), out_dtype),
            grid_spec=pltpu.PrefetchScalarGridSpec(
                num_scalar_prefetch=0,
                grid=grid,
                in_specs=[
                    pl.BlockSpec((tm, d_pad), lambda j, i: (i, 0)),
                    pl.BlockSpec((d_pad, tn), lambda j, i: (0, j)),
                    pl.BlockSpec((1, tn), lambda j, i: (0, j)),
                ],
                out_specs=pl.BlockSpec((tm, tn), lambda j, i: (i, j)),
            ),
            compiler_params=pltpu.CompilerParams(
                dimension_semantics=("parallel", "parallel"),
                vmem_limit_bytes=vmem_limit,
            ),
            cost_estimate=cost,
        )(x_in, w_pad, b_pad)
    else:
        grid = (m_blocks, c_blocks, d_pad // tk)
        out_padded = pl.pallas_call(
            _linear_k_loop_kernel,
            out_shape=jax.ShapeDtypeStruct((n_pad, c_pad), out_dtype),
            grid_spec=pltpu.PrefetchScalarGridSpec(
                num_scalar_prefetch=0,
                grid=grid,
                in_specs=[
                    pl.BlockSpec((tm, tk), lambda i, j, k: (i, k)),
                    pl.BlockSpec((tk, tn), lambda i, j, k: (k, j)),
                    pl.BlockSpec((1, tn), lambda i, j, k: (0, j)),
                ],
                out_specs=pl.BlockSpec((tm, tn), lambda i, j, k: (i, j)),
                scratch_shapes=[pltpu.VMEM((tm, tn), jnp.float32)],
            ),
            compiler_params=pltpu.CompilerParams(
                dimension_semantics=("parallel", "parallel", "arbitrary"),
                vmem_limit_bytes=vmem_limit,
            ),
            cost_estimate=cost,
        )(x_in, w_pad, b_pad)

    if (n_pad, c_pad) != (n, nclass):
        return out_padded[:n, :nclass]
    return out_padded


# ----------------------------- module wrapper ----------------------------------


class PallasCLSLayer:
    """Pallas TPU equivalent of CLS_LAYER (a single nn.Linear).

    The weight (PyTorch layout (C, D)) is transposed to (D, C) and zero-padded
    to lane-aligned (d_pad, c_pad) once at construction, so the per-call path
    does no weight padding/relayout.
    """

    def __init__(self, weight, bias):
        c, d = weight.shape
        assert bias.shape == (c,)
        self.input_dim = d
        self.nclass = c
        d_pad = _round_up(d, _LANE)
        c_pad = _round_up(c, _LANE)
        w_t = jnp.transpose(weight)  # (D, C)
        self.w_pad = jnp.pad(w_t, ((0, d_pad - d), (0, c_pad - c)))
        self.b_pad = jnp.pad(bias, (0, c_pad - c)).reshape(1, c_pad)

    def __call__(self, x, *, test_vmem_budget=None):
        lead = x.shape[:-1]
        if x.ndim != 2:
            x = x.reshape(-1, x.shape[-1])
        out = _cls_forward(
            x,
            self.w_pad,
            self.b_pad,
            nclass=self.nclass,
            test_vmem_budget=test_vmem_budget,
        )
        if out.shape[:-1] != lead:
            out = out.reshape(*lead, self.nclass)
        return out


# ----------------------------- init + test -------------------------------------


def init_cls_layer_params(key, input_dim, nclass, dtype=jnp.float32):
    """Deterministic init matching nn.Linear default (uniform +/- 1/sqrt(in))."""
    k_w, k_b = jax.random.split(key)
    bound = 1.0 / (input_dim**0.5)
    weight = jax.random.uniform(
        k_w, (nclass, input_dim), dtype=dtype, minval=-bound, maxval=bound
    )
    bias = jax.random.uniform(
        k_b, (nclass,), dtype=dtype, minval=-bound, maxval=bound
    )
    return weight, bias


def _run_case(key, batch, input_dim, nclass, test_vmem_budget=None):
    k_x, k_p = jax.random.split(key)
    x = jax.random.normal(k_x, (batch, input_dim), dtype=jnp.float32)
    weight, bias = init_cls_layer_params(k_p, input_dim, nclass)
    layer = PallasCLSLayer(weight, bias)
    out = jax.block_until_ready(layer(x, test_vmem_budget=test_vmem_budget))
    ref = x @ weight.T + bias
    assert out.shape == (batch, nclass)
    assert jnp.allclose(out, ref, atol=1e-4, rtol=1e-4), (
        f"mismatch for shape ({batch},{input_dim})x({nclass},{input_dim})"
    )


if __name__ == "__main__":
    key = jax.random.PRNGKey(0)
    k1, k2, k3 = jax.random.split(key, 3)

    # Small shape consistent with the module (ROI features -> class scores).
    _run_case(k1, batch=8, input_dim=32, nclass=16)

    # Non-aligned shapes -> exercises padding + waste-aware tile selection.
    _run_case(k2, batch=10, input_dim=200, nclass=30)

    # Exercise the K-loop + f32 accumulator path at small shapes by shrinking
    # the tile-selection VMEM budget (the real vmem_limit is unaffected).
    _run_case(k3, batch=16, input_dim=512, nclass=256, test_vmem_budget=1 << 20)

    print("KERNEL_OK")
</pallas_src>

<mosaic_0001>
module attributes {stable_mosaic.version = 11 : i64} {
  func.func @_linear_whole_k_kernel(%arg0: i32, %arg1: i32, %arg2: memref<8x128xf32, #tpu.memory_space<vmem>>, %arg3: memref<128x128xf32, #tpu.memory_space<vmem>>, %arg4: memref<1x128xf32, #tpu.memory_space<vmem>>, %arg5: memref<8x128xf32, #tpu.memory_space<vmem>>) attributes {dimension_semantics = [#tpu.dimension_semantics<parallel>, #tpu.dimension_semantics<parallel>], iteration_bounds = array<i64: 1, 1>, scalar_prefetch = 0 : i64, scratch_operands = 0 : i64, tpu.core_type = #tpu.core_type<tc>, window_params = [{transform_indices = @transform_0, window_bounds = array<i64: 8, 128>}, {transform_indices = @transform_1, window_bounds = array<i64: 128, 128>}, {transform_indices = @transform_2, window_bounds = array<i64: 1, 128>}, {transform_indices = @transform_3, window_bounds = array<i64: 8, 128>}]} {
    %c0 = arith.constant 0 : index
    %c0_0 = arith.constant 0 : index
    %0 = vector.load %arg2[%c0, %c0_0] : memref<8x128xf32, #tpu.memory_space<vmem>>, vector<8x128xf32>
    %c0_1 = arith.constant 0 : index
    %c0_2 = arith.constant 0 : index
    %1 = vector.load %arg3[%c0_1, %c0_2] : memref<128x128xf32, #tpu.memory_space<vmem>>, vector<128x128xf32>
    %cst = arith.constant dense<0.000000e+00> : vector<8x128xf32>
    %2 = tpu.matmul %0, %1, %cst {dimension_numbers = #tpu.dot_dimension_numbers<[1], [0], [0], [1], [0, 0, 1, 1], [], []>} : vector<8x128xf32>, vector<128x128xf32>, vector<8x128xf32> -> vector<8x128xf32>
    %c0_3 = arith.constant 0 : index
    %c0_4 = arith.constant 0 : index
    %3 = vector.load %arg4[%c0_3, %c0_4] : memref<1x128xf32, #tpu.memory_space<vmem>>, vector<1x128xf32>
    %4 = vector.broadcast %3 : vector<1x128xf32> to vector<8x128xf32>
    %5 = arith.addf %2, %4 : vector<8x128xf32>
    %c0_5 = arith.constant 0 : index
    %c0_6 = arith.constant 0 : index
    %6 = vector.load %arg5[%c0_5, %c0_6] : memref<8x128xf32, #tpu.memory_space<vmem>>, vector<8x128xf32>
    tpu.vector_store %arg5[%c0_5, %c0_6], %5 {strides = array<i32>} : memref<8x128xf32, #tpu.memory_space<vmem>>, vector<8x128xf32>,
    return
  }
  func.func @transform_0(%arg0: i32, %arg1: i32) -> (i32, i32) {
    %c0_i32 = arith.constant 0 : i32
    %c0_i32_0 = arith.constant 0 : i32
    return %arg1, %c0_i32 : i32, i32
  }
  func.func @transform_1(%arg0: i32, %arg1: i32) -> (i32, i32) {
    %c0_i32 = arith.constant 0 : i32
    %c0_i32_0 = arith.constant 0 : i32
    return %c0_i32, %arg0 : i32, i32
  }
  func.func @transform_2(%arg0: i32, %arg1: i32) -> (i32, i32) {
    %c0_i32 = arith.constant 0 : i32
    %c0_i32_0 = arith.constant 0 : i32
    return %c0_i32, %arg0 : i32, i32
  }
  func.func @transform_3(%arg0: i32, %arg1: i32) -> (i32, i32) {
    %c0_i32 = arith.constant 0 : i32
    return %arg1, %arg0 : i32, i32
  }
}

</mosaic_0001>

<bundles_post_ra>
// kernel: _cls_forward.1
= control target key start
LH: loop header
LB: loop body
LE: loop exit
PB: predicated region body
PF: predicated region fallthrough
CT: control target
= control target key end

     0   :  { %8 = vsyncpa [#allocation3], 0  ;;  %s183_s0 = inlined_call_operand.vmem [shape: f32[8,128], index: 0, kind: input, shape index: {}]   ;;  %s184_s1 = inlined_call_operand.hbm [shape: f32[128,128], index: 1, kind: input, shape index: {}]   ;;  %s185_s2 = inlined_call_operand.vmem [shape: f32[1,128], index: 2, kind: input, shape index: {}]   ;;  %s186_s3 = inlined_call_operand.hbm [shape: f32[8,128], index: 3, kind: output, shape index: {}]  }
   0x1   :  { %9 = vsyncpa [#allocation4], 0  ;;  %s16_s14 = sshll.u32 %s184_s1, 4  ;;  %s147_s15 = smov [#allocation2]   ;;  %s17_s14 = int_to_ptr.hbm [resolvable:$true] %s16_s14 }
   0x2   :  { %s18_s16 = sshll.u32 %s147_s15, 4  ;;  %s148_s17 = smov 128   ;;  %s19_s16 = int_to_ptr.vmem [resolvable:$true] %s18_s16 }
   0x3   :  { %s149_s18 = smov 8  }
   0x4   :  { %24 = dma.hbm_to_vmem [thread:$0]  %s17_s14, 2048, %s19_s16, [#allocation3], %s148_s17, %s148_s17, %s149_s18  }
   0x5   :  { %143 = dma.done.wait [#allocation3], 2048  }
   0x6   :  { %144 = vsyncadd [#allocation3], 4294965248  ;;  %v47_v0 = vld [vmem:[#allocation2 + $0x78] sm:$0xff]  ;;  %v46_v1 = vld [vmem:[#allocation2 + $0x70] sm:$0xff]  ;;  %s150_s22 = smov [#allocation5]   ;;  %s80_s26 = sshll.u32 %s186_s3, 4  ;;  %s81_s26 = int_to_ptr.hbm [resolvable:$true] %s80_s26 }
   0x7   :  { %52 = vmatpush.msra.mxu0 %v47_v0  ;;  %v45_v2 = vld [vmem:[#allocation2 + $0x68] sm:$0xff]  ;;  %v44_v3 = vld [vmem:[#allocation2 + $0x60] sm:$0xff]  ;;  %v43_v4 = vld [vmem:[#allocation2 + $0x58] sm:$0xff]  ;;  %s78_s23 = sshll.u32 %s150_s22, 4  ;;  %s79_s23 = int_to_ptr.vmem [resolvable:$true] %s78_s23 }
   0x8   :  { %v42_v5 = vld [vmem:[#allocation2 + $0x50] sm:$0xff]  ;;  %v41_v6 = vld [vmem:[#allocation2 + $0x48] sm:$0xff]  ;;  %v40_v7 = vld [vmem:[#allocation2 + $0x40] sm:$0xff] }
   0x9   :  { %53 = vmatpush.msra.mxu0 %v46_v1  ;;  %v39_v8 = vld [vmem:[#allocation2 + $0x38] sm:$0xff]  ;;  %v38_v9 = vld [vmem:[#allocation2 + $0x30] sm:$0xff]  ;;  %v37_v10 = vld [vmem:[#allocation2 + $0x28] sm:$0xff] }
   0xa   :  { %v36_v11 = vld [vmem:[#allocation2 + $0x20] sm:$0xff]  ;;  %v35_v12 = vld [vmem:[#allocation2 + $0x18] sm:$0xff]  ;;  %v34_v13 = vld [vmem:[#allocation2 + $0x10] sm:$0xff] }
   0xb   :  { %54 = vmatpush.msra.mxu0 %v45_v2  ;;  %v33_v14 = vld [vmem:[#allocation2 + $0x8] sm:$0xff]  ;;  %v32_v15 = vld [vmem:[#allocation2] sm:$0xff] }
   0xc   :  { %v31_v16 = vld [vmem:[%s183_s0] sm:$0xff] }
   0xd   :  { %55 = vmatpush.msra.mxu0 %v44_v3  ;;  %v94_v17 = vld [vmem:[%s185_s2] ss:$0 sm:$0xff] }
   0xf   :  { %56 = vmatpush.msra.mxu0 %v43_v4 }
  0x11   :  { %57 = vmatpush.msra.mxu0 %v42_v5 }
  0x13   :  { %58 = vmatpush.msra.mxu0 %v41_v6 }
  0x15   :  { %59 = vmatpush.msra.mxu0 %v40_v7 }
  0x17   :  { %60 = vmatpush.msra.mxu0 %v39_v8 }
  0x19   :  { %61 = vmatpush.msra.mxu0 %v38_v9 }
  0x1b   :  { %62 = vmatpush.msra.mxu0 %v37_v10 }
  0x1d   :  { %63 = vmatpush.msra.mxu0 %v36_v11 }
  0x1f   :  { %64 = vmatpush.msra.mxu0 %v35_v12 }
  0x21   :  { %65 = vmatpush.msra.mxu0 %v34_v13 }
  0x23   :  { %66 = vmatpush.msra.mxu0 %v33_v14 }
  0x25   :  { %67 = vmatpush.msra.mxu0 %v32_v15 }
  0x26   :  { %68 = vmatmul.f32.vlgmr.msra.gmra.mxu0 %v31_v16 }
  0xa3   :  { %v69_v18 = vpop.f32.mrf.mxu0 }
  0xa4   :  { %v70_v19 = vadd.f32 %v94_v17, %v69_v18 }
  0xa6   :  { %72 = vst [vmem:[#allocation5] sm:$0xff] %v70_v19 }
  0xa7   :  { %83 = dma.vmem_to_hbm [thread:$0]  %s79_s23, 128, %s81_s26, [#allocation4]  }
  0xa8   :  { %145 = dma.done.wait [#allocation4], 128  }
  0xa9   :  { %146 = vsyncadd [#allocation4], 4294967168 }
  0xaa   :  { %88 = vsyncpa [#allocation3], 1 }
  0xab   :  { %89 = vsyncpa [#allocation4], 1 }

</bundles_post_ra>
